<compile_context>
chip_gen: v6e
topology: v6e:2x2x1
jax: 0.10.0
libtpu: 0.0.40
codegen_flags: <defaults>
</compile_context>

<pallas_src>
import math

import jax
import jax.numpy as jnp
from jax.experimental import pallas as pl
from jax.experimental.pallas import tpu as pltpu


# ---------------------------------------------------------------------------
# Fused Pallas kernel: x_flat -> [GEMM + ReLU]*L -> GEMM(beta) -> out
# ---------------------------------------------------------------------------

def _fused_forward_kernel(x_ref, *refs):
    """refs = (w_ref_0, ..., w_ref_{L-1}, beta_ref, o_ref).

    Layer count is static, so the layer loop unrolls at trace time; all
    intermediate activations stay in registers (never written to HBM).
    """
    *w_refs, beta_ref, o_ref = refs
    y = x_ref[...]                                   # (N, C0*D0) f32
    for w_ref in w_refs:                             # statically unrolled
        y = jnp.maximum(
            jnp.dot(y, w_ref[...], preferred_element_type=jnp.float32), 0.0)
    o_ref[...] = jnp.dot(y, beta_ref[...], preferred_element_type=jnp.float32)


# ---------------------------------------------------------------------------
# One-time parameter re-layout (hoisted out of the per-call path)
# ---------------------------------------------------------------------------

def prepare_params(weights, beta, filter_sizes, in_channels, dimension):
    """Build dense per-layer GEMM matrices from the PyTorch parameters.

    For each layer with weight (1, O, C, P, fs), produce W of shape (C*D, O*P) with
        W[c*D + p*fs + f, o*P + p] = w[0, o, c, p, f] / sqrt(fs*C)
    so that  y_flat(N, C*D) @ W  equals the pre-ReLU LocBlock output in channel-major
    (N, O, P) flattened order -- exactly the next layer's flattened (N, C, D) input
    (and, for the last layer, exactly torch's y.reshape(N, -1)).
    The 1/sqrt(beta.shape[0]) NTK scale is folded into beta.
    """
    dense_ws = []
    C, D = in_channels, dimension
    for w, fs in zip(weights, filter_sizes):
        assert D % fs == 0, f"spatial dim {D} not divisible by filter size {fs}"
        O = w.shape[1]
        P = D // fs
        scale = 1.0 / math.sqrt(fs * C)
        wt = jnp.transpose(w[0], (1, 2, 3, 0))           # (C, P, fs, O)
        eye = jnp.eye(P, dtype=w.dtype)                  # (P, P) patch selector
        wd = jnp.einsum('cpfo,pq->cpfoq', wt, eye)       # (C, P, fs, O, P)
        dense_ws.append(wd.reshape(C * D, O * P) * scale)
        C, D = O, P
    beta_scaled = beta * (1.0 / math.sqrt(beta.shape[0]))
    return dense_ws, beta_scaled


# ---------------------------------------------------------------------------
# Forward wrapper: a single pallas_call
# ---------------------------------------------------------------------------

@jax.jit
def locnet1dnt_forward(x, dense_ws, beta_scaled):
    """x: (N, in_channels, dimension) f32 -> (N, out_dim) f32."""
    N = x.shape[0]
    x_flat = x.reshape(N, -1)                            # contiguous reshape, no transpose
    out_dim = beta_scaled.shape[1]

    in_specs = [pl.BlockSpec(x_flat.shape, lambda i: (0, 0))]
    in_specs += [pl.BlockSpec(w.shape, lambda i: (0, 0)) for w in dense_ws]
    in_specs += [pl.BlockSpec(beta_scaled.shape, lambda i: (0, 0))]

    return pl.pallas_call(
        _fused_forward_kernel,
        out_shape=jax.ShapeDtypeStruct((N, out_dim), jnp.float32),
        grid=(1,),
        in_specs=in_specs,
        out_specs=pl.BlockSpec((N, out_dim), lambda i: (0, 0)),
        compiler_params=pltpu.CompilerParams(
            dimension_semantics=("arbitrary",)),
    )(x_flat, *dense_ws, beta_scaled)


# ---------------------------------------------------------------------------
# Pure-JAX reference (mirrors the PyTorch module exactly)
# ---------------------------------------------------------------------------

def ref_forward(x, weights, beta, filter_sizes):
    y = x
    for w, fs in zip(weights, filter_sizes):
        N, C, D = y.shape
        P = D // fs
        xu = y.reshape(N, C, P, fs)
        z = jnp.einsum('ncpf,ocpf->nop', xu, w[0])
        y = jax.nn.relu(z / math.sqrt(fs * C))
    yf = y.reshape(y.shape[0], -1)
    return yf @ beta / math.sqrt(beta.shape[0])


# ---------------------------------------------------------------------------
# Main
# ---------------------------------------------------------------------------

if __name__ == "__main__":
    # Small shapes consistent with the module:
    #   N=2 points, in_channels=4, dimension=16, filter_sizes=[4, 4], h=32, out_dim=1
    N = 2
    in_channels = 4
    dimension = 16
    filter_sizes = [4, 4]
    h = 32
    out_dim = 1

    key = jax.random.PRNGKey(0)
    k_x, k_beta, *k_ws = jax.random.split(key, 2 + len(filter_sizes))

    x = jax.random.normal(k_x, (N, in_channels, dimension), jnp.float32)

    # Parameters with the same shapes as torch.randn in __init__.
    weights = []
    c, d = in_channels, dimension
    for kw, fs in zip(k_ws, filter_sizes):
        P = d // fs
        weights.append(jax.random.normal(kw, (1, h, c, P, fs), jnp.float32))
        c, d = h, P

    total_prod = 1
    for fs in filter_sizes:
        total_prod *= fs
    beta = jax.random.normal(
        k_beta, (h * dimension // total_prod, out_dim), jnp.float32)

    # One-time hoisted weight re-layout (unfold + block-diag + NTK scale folded in).
    dense_ws, beta_scaled = prepare_params(
        weights, beta, filter_sizes, in_channels, dimension)

    out = locnet1dnt_forward(x, dense_ws, beta_scaled)
    out = jax.block_until_ready(out)

    ref = ref_forward(x, weights, beta, filter_sizes)
    assert out.shape == (N, out_dim), out.shape
    assert jnp.allclose(out, ref, atol=1e-4, rtol=1e-4), (out, ref)

    print("KERNEL_OK")
</pallas_src>

<mosaic_0001>
module attributes {stable_mosaic.version = 11 : i64} {
  func.func @_fused_forward_kernel(%arg0: i32, %arg1: memref<2x64xf32, #tpu.memory_space<vmem>>, %arg2: memref<64x128xf32, #tpu.memory_space<vmem>>, %arg3: memref<128x32xf32, #tpu.memory_space<vmem>>, %arg4: memref<32x1xf32, #tpu.memory_space<vmem>>, %arg5: memref<2x1xf32, #tpu.memory_space<vmem>>) attributes {dimension_semantics = [#tpu.dimension_semantics<arbitrary>], iteration_bounds = array<i64: 1>, scalar_prefetch = 0 : i64, scratch_operands = 0 : i64, tpu.core_type = #tpu.core_type<tc>, window_params = [{pipeline_mode = #tpu.pipeline_mode<synchronous>, transform_indices = @transform_0, window_bounds = array<i64: 2, 64>}, {pipeline_mode = #tpu.pipeline_mode<synchronous>, transform_indices = @transform_1, window_bounds = array<i64: 64, 128>}, {pipeline_mode = #tpu.pipeline_mode<synchronous>, transform_indices = @transform_2, window_bounds = array<i64: 128, 32>}, {pipeline_mode = #tpu.pipeline_mode<synchronous>, transform_indices = @transform_3, window_bounds = array<i64: 32, 1>}, {pipeline_mode = #tpu.pipeline_mode<synchronous>, transform_indices = @transform_4, window_bounds = array<i64: 2, 1>}]} {
    %c0 = arith.constant 0 : index
    %c0_0 = arith.constant 0 : index
    %0 = vector.load %arg1[%c0, %c0_0] : memref<2x64xf32, #tpu.memory_space<vmem>>, vector<2x64xf32>
    %c0_1 = arith.constant 0 : index
    %c0_2 = arith.constant 0 : index
    %1 = vector.load %arg2[%c0_1, %c0_2] : memref<64x128xf32, #tpu.memory_space<vmem>>, vector<64x128xf32>
    %cst = arith.constant dense<0.000000e+00> : vector<2x128xf32>
    %2 = tpu.matmul %0, %1, %cst {dimension_numbers = #tpu.dot_dimension_numbers<[1], [0], [0], [1], [0, 0, 1, 1], [], []>} : vector<2x64xf32>, vector<64x128xf32>, vector<2x128xf32> -> vector<2x128xf32>
    %cst_3 = arith.constant 0.000000e+00 : f32
    %3 = vector.broadcast %cst_3 : f32 to vector<2x128xf32>
    %4 = arith.maximumf %2, %3 : vector<2x128xf32>
    %c0_4 = arith.constant 0 : index
    %c0_5 = arith.constant 0 : index
    %5 = vector.load %arg3[%c0_4, %c0_5] : memref<128x32xf32, #tpu.memory_space<vmem>>, vector<128x32xf32>
    %cst_6 = arith.constant dense<0.000000e+00> : vector<2x32xf32>
    %6 = tpu.matmul %4, %5, %cst_6 {dimension_numbers = #tpu.dot_dimension_numbers<[1], [0], [0], [1], [0, 0, 1, 1], [], []>} : vector<2x128xf32>, vector<128x32xf32>, vector<2x32xf32> -> vector<2x32xf32>
    %cst_7 = arith.constant 0.000000e+00 : f32
    %7 = vector.broadcast %cst_7 : f32 to vector<2x32xf32>
    %8 = arith.maximumf %6, %7 : vector<2x32xf32>
    %c0_8 = arith.constant 0 : index
    %c0_9 = arith.constant 0 : index
    %9 = vector.load %arg4[%c0_8, %c0_9] : memref<32x1xf32, #tpu.memory_space<vmem>>, vector<32x1xf32>
    %cst_10 = arith.constant dense<0.000000e+00> : vector<2x1xf32>
    %10 = tpu.matmul %8, %9, %cst_10 {dimension_numbers = #tpu.dot_dimension_numbers<[1], [0], [0], [1], [0, 0, 1, 1], [], []>} : vector<2x32xf32>, vector<32x1xf32>, vector<2x1xf32> -> vector<2x1xf32>
    %c0_11 = arith.constant 0 : index
    %c0_12 = arith.constant 0 : index
    %11 = vector.load %arg5[%c0_11, %c0_12] : memref<2x1xf32, #tpu.memory_space<vmem>>, vector<2x1xf32>
    tpu.vector_store %arg5[%c0_11, %c0_12], %10 {strides = array<i32>} : memref<2x1xf32, #tpu.memory_space<vmem>>, vector<2x1xf32>,
    return
  }
  func.func @transform_0(%arg0: i32) -> (i32, i32) {
    %c0_i32 = arith.constant 0 : i32
    %c0_i32_0 = arith.constant 0 : i32
    %c0_i32_1 = arith.constant 0 : i32
    return %c0_i32, %c0_i32_0 : i32, i32
  }
  func.func @transform_1(%arg0: i32) -> (i32, i32) {
    %c0_i32 = arith.constant 0 : i32
    %c0_i32_0 = arith.constant 0 : i32
    %c0_i32_1 = arith.constant 0 : i32
    return %c0_i32, %c0_i32_0 : i32, i32
  }
  func.func @transform_2(%arg0: i32) -> (i32, i32) {
    %c0_i32 = arith.constant 0 : i32
    %c0_i32_0 = arith.constant 0 : i32
    %c0_i32_1 = arith.constant 0 : i32
    return %c0_i32, %c0_i32_0 : i32, i32
  }
  func.func @transform_3(%arg0: i32) -> (i32, i32) {
    %c0_i32 = arith.constant 0 : i32
    %c0_i32_0 = arith.constant 0 : i32
    %c0_i32_1 = arith.constant 0 : i32
    return %c0_i32, %c0_i32_0 : i32, i32
  }
  func.func @transform_4(%arg0: i32) -> (i32, i32) {
    %c0_i32 = arith.constant 0 : i32
    %c0_i32_0 = arith.constant 0 : i32
    %c0_i32_1 = arith.constant 0 : i32
    return %c0_i32, %c0_i32_0 : i32, i32
  }
}

</mosaic_0001>

<bundles_post_ra>
// kernel: locnet1dnt_forward.1
= control target key start
LH: loop header
LB: loop body
LE: loop exit
PB: predicated region body
PF: predicated region fallthrough
CT: control target
= control target key end

     0   :  { %v372_v0 = vmov 0.0   ;;  %vm373_vm0 = vmmov 0   ;;  %vm26_vm1 = vcmask 523264   ;;  %vm192_vm2 = vcmask 261120   ;;  %s523_s1 = inlined_call_operand.vmem [shape: f32[64,128], index: 1, kind: input, shape index: {}]   ;;  %s524_s2 = inlined_call_operand.vmem [shape: f32[128,32], index: 2, kind: input, shape index: {}]   ;;  %s525_s0 = inlined_call_operand.vmem [shape: f32[2,64], index: 0, kind: input, shape index: {}]   ;;  %s526_s3 = inlined_call_operand.vmem [shape: f32[32,1], index: 3, kind: input, shape index: {}]   ;;  %s527_s4 = inlined_call_operand.vmem [shape: f32[2,1], index: 4, kind: output, shape index: {}]  }
   0x1   :  { %305 = vmatprep.subr.mxu0 %v372_v0  ;;  %v25_v1 = vld [vmem:[%s523_s1 + $0x38] sm:$0xff]  ;;  %v24_v2 = vld [vmem:[%s523_s1 + $0x30] sm:$0xff]  ;;  %321 = vmatprep.mubr.msk.f32.mxu0 %vm373_vm0, %v372_v0  ;;  %v23_v3 = vld [vmem:[%s523_s1 + $0x28] sm:$0xff]  ;;  %vm266_vm3 = vcmask 1024  }
   0x2   :  { %306 = vmatpush3.msra.mxu0 %v25_v1  ;;  %324 = vmatprep.subr.mxu1 %v372_v0  ;;  %v116_v4 = vld [vmem:[%s524_s2 + $0x78] sm:$0xff]  ;;  %v115_v5 = vld [vmem:[%s524_s2 + $0x70] sm:$0xff]  ;;  %v22_v6 = vld [vmem:[%s523_s1 + $0x20] sm:$0xff] }
   0x3   :  { %307 = vmatprep.subr.mxu0 %v372_v0  ;;  %356 = vmatprep.mubr.msk.f32.mxu1 %vm373_vm0, %v372_v0  ;;  %v114_v7 = vld [vmem:[%s524_s2 + $0x68] sm:$0xff]  ;;  %v21_v8 = vld [vmem:[%s523_s1 + $0x18] sm:$0xff]  ;;  %v113_v9 = vld [vmem:[%s524_s2 + $0x60] sm:$0xff] }
   0x4   :  { %308 = vmatpush3.msra.mxu0 %v24_v2  ;;  %325 = vmatpush3.msra.mxu1 %v116_v4  ;;  %v20_v10 = vld [vmem:[%s523_s1 + $0x10] sm:$0xff]  ;;  %v112_v11 = vld [vmem:[%s524_s2 + $0x58] sm:$0xff]  ;;  %v19_v12 = vld [vmem:[%s523_s1 + $0x8] sm:$0xff] }
   0x5   :  { %309 = vmatprep.subr.mxu0 %v372_v0  ;;  %326 = vmatprep.subr.mxu1 %v372_v0  ;;  %v111_v13 = vld [vmem:[%s524_s2 + $0x50] sm:$0xff]  ;;  %v18_v14 = vld [vmem:[%s523_s1] sm:$0xff]  ;;  %v110_v16 = vld [vmem:[%s524_s2 + $0x48] sm:$0xff] }
   0x6   :  { %310 = vmatpush3.msra.mxu0 %v23_v3  ;;  %327 = vmatpush3.msra.mxu1 %v115_v5  ;;  %v17_v15 = vld [vmem:[%s525_s0] sm:$0x3]  ;;  %v108_v18 = vld [vmem:[%s524_s2 + $0x38] sm:$0xff]  ;;  %v107_v19 = vld [vmem:[%s524_s2 + $0x30] sm:$0xff] }
   0x7   :  { %311 = vmatprep.subr.mxu0 %v372_v0  ;;  %328 = vmatprep.subr.mxu1 %v372_v0  ;;  %v109_v17 = vld [vmem:[%s524_s2 + $0x40] sm:$0xff]  ;;  %v106_v20 = vld [vmem:[%s524_s2 + $0x28] sm:$0xff]  ;;  %v104_v22 = vld [vmem:[%s524_s2 + $0x18] sm:$0xff] }
   0x8   :  { %312 = vmatpush3.msra.mxu0 %v22_v6  ;;  %329 = vmatpush3.msra.mxu1 %v114_v7  ;;  %v105_v21 = vld [vmem:[%s524_s2 + $0x20] sm:$0xff]  ;;  %v103_v23 = vld [vmem:[%s524_s2 + $0x10] sm:$0xff]  ;;  %v102_v24 = vld [vmem:[%s524_s2 + $0x8] sm:$0xff] }
   0x9   :  { %313 = vmatprep.subr.mxu0 %v372_v0  ;;  %330 = vmatprep.subr.mxu1 %v372_v0  ;;  %v101_v25 = vld [vmem:[%s524_s2] sm:$0xff]  ;;  %v191_v26 = vld [vmem:[%s526_s3 + $0x18] sm:$0xff]  ;;  %v190_v27 = vld [vmem:[%s526_s3 + $0x10] sm:$0xff] }
   0xa   :  { %314 = vmatpush3.msra.mxu0 %v21_v8  ;;  %331 = vmatpush3.msra.mxu1 %v113_v9  ;;  %v189_v31 = vld [vmem:[%s526_s3 + $0x8] sm:$0xff]  ;;  %v188_v32 = vld [vmem:[%s526_s3] sm:$0xff] }
   0xb   :  { %315 = vmatprep.subr.mxu0 %v372_v0  ;;  %332 = vmatprep.subr.mxu1 %v372_v0 }
   0xc   :  { %316 = vmatpush3.msra.mxu0 %v20_v10  ;;  %333 = vmatpush3.msra.mxu1 %v112_v11 }
   0xd   :  { %317 = vmatprep.subr.mxu0 %v372_v0  ;;  %334 = vmatprep.subr.mxu1 %v372_v0 }
   0xe   :  { %318 = vmatpush3.msra.mxu0 %v19_v12  ;;  %335 = vmatpush3.msra.mxu1 %v111_v13 }
   0xf   :  { %319 = vmatprep.subr.mxu0 %v372_v0  ;;  %336 = vmatprep.subr.mxu1 %v372_v0 }
  0x10   :  { %320 = vmatpush3.msra.mxu0 %v18_v14  ;;  %337 = vmatpush3.msra.mxu1 %v110_v16 }
  0x11   :  { %322 = vmatmul.mubr.msk.f32.vlgmr.msra.gmra.mxu0 %vm26_vm1, %v17_v15  ;;  %338 = vmatprep.subr.mxu1 %v372_v0 }
  0x12   :  { %359 = vmatprep.subr.mxu0 %v372_v0  ;;  %339 = vmatpush3.msra.mxu1 %v109_v17 }
  0x13   :  { %367 = vmatprep.mubr.msk.f32.mxu0 %vm373_vm0, %v372_v0  ;;  %340 = vmatprep.subr.mxu1 %v372_v0 }
  0x14   :  { %341 = vmatpush3.msra.mxu1 %v108_v18  ;;  %360 = vmatpush3.msra.mxu0 %v191_v26 }
  0x15   :  { %342 = vmatprep.subr.mxu1 %v372_v0  ;;  %361 = vmatprep.subr.mxu0 %v372_v0 }
  0x16   :  { %343 = vmatpush3.msra.mxu1 %v107_v19  ;;  %362 = vmatpush3.msra.mxu0 %v190_v27 }
  0x17   :  { %344 = vmatprep.subr.mxu1 %v372_v0  ;;  %363 = vmatprep.subr.mxu0 %v372_v0 }
  0x18   :  { %345 = vmatpush3.msra.mxu1 %v106_v20  ;;  %364 = vmatpush3.msra.mxu0 %v189_v31 }
  0x19   :  { %346 = vmatprep.subr.mxu1 %v372_v0  ;;  %365 = vmatprep.subr.mxu0 %v372_v0 }
  0x1a   :  { %347 = vmatpush3.msra.mxu1 %v105_v21  ;;  %366 = vmatpush3.msra.mxu0 %v188_v32 }
  0x1b   :  { %348 = vmatprep.subr.mxu1 %v372_v0 }
  0x1c   :  { %349 = vmatpush3.msra.mxu1 %v104_v22 }
  0x1d   :  { %350 = vmatprep.subr.mxu1 %v372_v0 }
  0x1e   :  { %351 = vmatpush3.msra.mxu1 %v103_v23 }
  0x1f   :  { %352 = vmatprep.subr.mxu1 %v372_v0 }
  0x20   :  { %353 = vmatpush3.msra.mxu1 %v102_v24 }
  0x21   :  { %354 = vmatprep.subr.mxu1 %v372_v0 }
  0x22   :  { %355 = vmatpush3.msra.mxu1 %v101_v25 }
  0xd1   :  { %v96_v28 = vpop.f32.mrf.mxu0 }
  0xd2   :  { %v100_v29 = vmax.f32 %v96_v28, 0.0 }
  0xd3   :  { %v323_v30 = vpop.f32.mrf.mxu0 }
  0xd4   :  { %357 = vmatmul.mubr.f32.vlgmr.msra.gmra.mxu1 %v100_v29 }
 0x194   :  { %v183_v33 = vpop.f32.mrf.mxu1 }
 0x195   :  { %v187_v34 = vmax.f32 %v183_v33, 0.0 }
 0x196   :  { %v358_v35 = vpop.f32.mrf.mxu1 }
 0x197   :  { %368 = vmatmul.mubr.msk.f32.vlgmr.msra.gmra.mxu0 %vm192_vm2, %v187_v34 }
 0x257   :  { %v262_v36 = vpop.f32.mrf.mxu0 }
 0x258   :  { %267 = vst.msk [vmem:[%s527_s4] sm:$0x3] %vm266_vm3, %v262_v36 }
 0x259   :  { %v369_v37 = vpop.f32.mrf.mxu0 }

</bundles_post_ra>
